<compile_context>
chip_gen: v5e
topology: v5e:2x2
jax: 0.10.0
libtpu: 0.0.40
codegen_flags: <defaults>
</compile_context>

<pallas_src>
import jax
import jax.numpy as jnp
from jax.experimental import pallas as pl
from jax.experimental.pallas import tpu as pltpu


FEAT_IN = 10                 # Linear(10, 39)
FEAT_HID = 39
FEAT_OUT = 39
LANE = 128                   # lane-dense padded hidden width
DEFAULT_TILE_B = 1024        # large batch tile: grid-step overhead is the dominant cost
SMALL_BATCH_THRESHOLD = 512  # below this, plain XLA beats the custom-call overhead

_PRECISION = jax.lax.Precision.HIGHEST


def _round_up(x, m):
    return (x + m - 1) // m * m


# --------------------------------------------------------------------------- kernel
def _generator_mlp_kernel(x_ref, w1_ref, b1_ref, w2_ref, b2_ref, w3_ref, b3_ref, o_ref):
    # x_ref: (tile_b, 10); weights lane-padded to 128 wide; output stored 39 wide.
    x = x_ref[...]

    h = jnp.dot(x, w1_ref[...], preferred_element_type=jnp.float32,
                precision=_PRECISION) + b1_ref[...]
    h = jnp.maximum(h, 0.0)

    h = jnp.dot(h, w2_ref[...], preferred_element_type=jnp.float32,
                precision=_PRECISION) + b2_ref[...]
    h = jnp.maximum(h, 0.0)

    h = jnp.dot(h, w3_ref[...], preferred_element_type=jnp.float32,
                precision=_PRECISION) + b3_ref[...]
    h = jnp.maximum(h, 0.0)

    # Direct 39-wide store: HBM writeback dominates here, so do NOT write 128 padded
    # lanes and slice in the wrapper.
    o_ref[...] = h[:, :FEAT_OUT].astype(o_ref.dtype)


def _const_spec(shape):
    # Weight / bias block: same block index every grid step -> DMA'd once, VMEM-resident.
    return pl.BlockSpec(shape, lambda i: (0, 0))


# --------------------------------------------------------------------------- params
def init_params(key):
    """Deterministic init mimicking nn.Linear.

    PyTorch nn.Linear(in, out) has weight [out, in], bias [out]. We store the
    transposed weight [in, out] so the kernel computes x @ W + b. Biases are [1, out].
    """
    dims = [(FEAT_IN, FEAT_HID), (FEAT_HID, FEAT_HID), (FEAT_HID, FEAT_OUT)]
    params = []
    for din, dout in dims:
        kw, kb, key = jax.random.split(key, 3)
        bound = 1.0 / jnp.sqrt(jnp.float32(din))  # PyTorch default uniform bound
        w = jax.random.uniform(kw, (din, dout), jnp.float32, -bound, bound)
        b = jax.random.uniform(kb, (1, dout), jnp.float32, -bound, bound)
        params.extend([w, b])
    return tuple(params)


def prepare_params(params):
    """One-time lane-dense (128-wide) zero-padding of the tiny weights/biases.

    Hoisted out of the forward path so the per-call graph contains only the kernel.
    """
    w1, b1, w2, b2, w3, b3 = params
    w1p = jnp.pad(w1, ((0, 0), (0, LANE - FEAT_HID)))
    b1p = jnp.pad(b1, ((0, 0), (0, LANE - FEAT_HID)))
    w2p = jnp.pad(w2, ((0, LANE - FEAT_HID), (0, LANE - FEAT_HID)))
    b2p = jnp.pad(b2, ((0, 0), (0, LANE - FEAT_HID)))
    w3p = jnp.pad(w3, ((0, LANE - FEAT_HID), (0, LANE - FEAT_OUT)))
    b3p = jnp.pad(b3, ((0, 0), (0, LANE - FEAT_OUT)))
    return (w1p, b1p, w2p, b2p, w3p, b3p)


# --------------------------------------------------------------------------- forward
def _choose_tile_b(B, tile_b):
    """Batch tile: multiple of 8, <= requested, and (when B allows) >= 2 grid steps
    so both v7x TensorCores get work."""
    tile_b = int(tile_b)
    if B > 8:
        tile_b = min(tile_b, _round_up((B + 1) // 2, 8))
    return max(8, min(tile_b, _round_up(B, 8)))


def _generator_forward_pallas(noise, padded_params, tile_b):
    w1p, b1p, w2p, b2p, w3p, b3p = padded_params
    B = noise.shape[0]

    tile_b = _choose_tile_b(B, tile_b)
    b_pad = _round_up(B, tile_b)
    x = noise if b_pad == B else jnp.pad(noise, ((0, b_pad - B), (0, 0)))
    num_tiles = b_pad // tile_b

    in_specs = [
        pl.BlockSpec((tile_b, FEAT_IN), lambda i: (i, 0)),   # streamed noise tile
        _const_spec((FEAT_IN, LANE)), _const_spec((1, LANE)),
        _const_spec((LANE, LANE)),    _const_spec((1, LANE)),
        _const_spec((LANE, LANE)),    _const_spec((1, LANE)),
    ]
    out_specs = pl.BlockSpec((tile_b, FEAT_OUT), lambda i: (i, 0))

    # Advisory cost estimate (39-wide output layout).
    flops = 2 * b_pad * (FEAT_IN * LANE + 2 * LANE * LANE)
    bytes_accessed = (
        b_pad * (FEAT_IN + FEAT_OUT) * 4
        + (FEAT_IN * LANE + 2 * LANE * LANE + 3 * LANE) * 4
    )
    cost = pl.CostEstimate(flops=flops, transcendentals=0,
                           bytes_accessed=bytes_accessed)

    out = pl.pallas_call(
        _generator_mlp_kernel,
        out_shape=jax.ShapeDtypeStruct((b_pad, FEAT_OUT), jnp.float32),
        grid=(num_tiles,),
        in_specs=in_specs,
        out_specs=out_specs,
        compiler_params=pltpu.CompilerParams(
            dimension_semantics=("parallel",),   # shard batch over TCs on v7x
            vmem_limit_bytes=32 * 1024 * 1024,   # safe on v5e/v6e/v7x; tiles use << this
        ),
        cost_estimate=cost,
    )(x, w1p, b1p, w2p, b2p, w3p, b3p)

    return out if b_pad == B else out[:B]


def reference_forward(noise, params):
    """Plain-JAX reference (f32, HIGHEST precision to mirror PyTorch f32 matmuls)."""
    w1, b1, w2, b2, w3, b3 = params
    h = jnp.maximum(jnp.dot(noise, w1, precision=_PRECISION) + b1, 0.0)
    h = jnp.maximum(jnp.dot(h, w2, precision=_PRECISION) + b2, 0.0)
    h = jnp.maximum(jnp.dot(h, w3, precision=_PRECISION) + b3, 0.0)
    return h


def generator_forward(noise, params, *, padded_params=None,
                      tile_b=DEFAULT_TILE_B, force_kernel=False):
    """noise: [B, 10] float32 -> [B, 39] float32 (matches the PyTorch Generator)."""
    B = noise.shape[0]
    if not force_kernel and B < SMALL_BATCH_THRESHOLD:
        # Tiny-batch fast path: fused XLA matmul chain beats custom-call dispatch.
        return reference_forward(noise, params)
    if padded_params is None:
        padded_params = prepare_params(params)
    return _generator_forward_pallas(noise, padded_params, tile_b)


# --------------------------------------------------------------------------- main
if __name__ == "__main__":
    key = jax.random.PRNGKey(0)
    k_small, k_large, k_params = jax.random.split(key, 3)
    params = init_params(k_params)
    padded = prepare_params(params)   # one-time prep, hoisted out of the forward

    # Small batch: force the Pallas path so the kernel itself is exercised.
    batch = 8
    noise = jax.random.normal(k_small, (batch, FEAT_IN), dtype=jnp.float32)
    fwd_small = jax.jit(
        lambda x: generator_forward(x, params, padded_params=padded, force_kernel=True))
    out = jax.block_until_ready(fwd_small(noise))
    ref = reference_forward(noise, params)
    assert out.shape == (batch, FEAT_OUT), out.shape
    assert jnp.allclose(out, ref, atol=1e-5, rtol=1e-5), "small-batch mismatch"

    # Larger, non-multiple batch: exercises the 2-tile grid + ragged-row padding path
    # (and the auto-dispatch, since 1000 >= SMALL_BATCH_THRESHOLD).
    batch2 = 1000
    noise2 = jax.random.normal(k_large, (batch2, FEAT_IN), dtype=jnp.float32)
    fwd_large = jax.jit(lambda x: generator_forward(x, params, padded_params=padded))
    out2 = jax.block_until_ready(fwd_large(noise2))
    ref2 = reference_forward(noise2, params)
    assert out2.shape == (batch2, FEAT_OUT), out2.shape
    assert jnp.allclose(out2, ref2, atol=1e-5, rtol=1e-5), "tiled-batch mismatch"

    print("KERNEL_OK")
</pallas_src>

<mosaic_0001>
module attributes {stable_mosaic.version = 11 : i64} {
  func.func @_generator_mlp_kernel(%arg0: i32, %arg1: memref<8x10xf32, #tpu.memory_space<vmem>>, %arg2: memref<10x128xf32, #tpu.memory_space<vmem>>, %arg3: memref<1x128xf32, #tpu.memory_space<vmem>>, %arg4: memref<128x128xf32, #tpu.memory_space<vmem>>, %arg5: memref<1x128xf32, #tpu.memory_space<vmem>>, %arg6: memref<128x128xf32, #tpu.memory_space<vmem>>, %arg7: memref<1x128xf32, #tpu.memory_space<vmem>>, %arg8: memref<8x39xf32, #tpu.memory_space<vmem>>) attributes {dimension_semantics = [#tpu.dimension_semantics<parallel>], iteration_bounds = array<i64: 1>, scalar_prefetch = 0 : i64, scratch_operands = 0 : i64, tpu.core_type = #tpu.core_type<tc>, window_params = [{transform_indices = @transform_0, window_bounds = array<i64: 8, 10>}, {pipeline_mode = #tpu.pipeline_mode<synchronous>, transform_indices = @transform_1, window_bounds = array<i64: 10, 128>}, {pipeline_mode = #tpu.pipeline_mode<synchronous>, transform_indices = @transform_2, window_bounds = array<i64: 1, 128>}, {pipeline_mode = #tpu.pipeline_mode<synchronous>, transform_indices = @transform_3, window_bounds = array<i64: 128, 128>}, {pipeline_mode = #tpu.pipeline_mode<synchronous>, transform_indices = @transform_4, window_bounds = array<i64: 1, 128>}, {pipeline_mode = #tpu.pipeline_mode<synchronous>, transform_indices = @transform_5, window_bounds = array<i64: 128, 128>}, {pipeline_mode = #tpu.pipeline_mode<synchronous>, transform_indices = @transform_6, window_bounds = array<i64: 1, 128>}, {transform_indices = @transform_7, window_bounds = array<i64: 8, 39>}]} {
    %c0 = arith.constant 0 : index
    %c0_0 = arith.constant 0 : index
    %0 = vector.load %arg1[%c0, %c0_0] : memref<8x10xf32, #tpu.memory_space<vmem>>, vector<8x10xf32>
    %c0_1 = arith.constant 0 : index
    %c0_2 = arith.constant 0 : index
    %1 = vector.load %arg2[%c0_1, %c0_2] : memref<10x128xf32, #tpu.memory_space<vmem>>, vector<10x128xf32>
    %cst = arith.constant dense<0.000000e+00> : vector<8x128xf32>
    %2 = tpu.matmul %0, %1, %cst {dimension_numbers = #tpu.dot_dimension_numbers<[1], [0], [0], [1], [0, 0, 1, 1], [], []>, precision = #tpu.contract_precision<fp32>} : vector<8x10xf32>, vector<10x128xf32>, vector<8x128xf32> -> vector<8x128xf32>
    %c0_3 = arith.constant 0 : index
    %c0_4 = arith.constant 0 : index
    %3 = vector.load %arg3[%c0_3, %c0_4] : memref<1x128xf32, #tpu.memory_space<vmem>>, vector<1x128xf32>
    %4 = vector.broadcast %3 : vector<1x128xf32> to vector<8x128xf32>
    %5 = arith.addf %2, %4 : vector<8x128xf32>
    %cst_5 = arith.constant 0.000000e+00 : f32
    %6 = vector.broadcast %cst_5 : f32 to vector<8x128xf32>
    %7 = arith.maximumf %5, %6 : vector<8x128xf32>
    %c0_6 = arith.constant 0 : index
    %c0_7 = arith.constant 0 : index
    %8 = vector.load %arg4[%c0_6, %c0_7] : memref<128x128xf32, #tpu.memory_space<vmem>>, vector<128x128xf32>
    %cst_8 = arith.constant dense<0.000000e+00> : vector<8x128xf32>
    %9 = tpu.matmul %7, %8, %cst_8 {dimension_numbers = #tpu.dot_dimension_numbers<[1], [0], [0], [1], [0, 0, 1, 1], [], []>, precision = #tpu.contract_precision<fp32>} : vector<8x128xf32>, vector<128x128xf32>, vector<8x128xf32> -> vector<8x128xf32>
    %c0_9 = arith.constant 0 : index
    %c0_10 = arith.constant 0 : index
    %10 = vector.load %arg5[%c0_9, %c0_10] : memref<1x128xf32, #tpu.memory_space<vmem>>, vector<1x128xf32>
    %11 = vector.broadcast %10 : vector<1x128xf32> to vector<8x128xf32>
    %12 = arith.addf %9, %11 : vector<8x128xf32>
    %cst_11 = arith.constant 0.000000e+00 : f32
    %13 = vector.broadcast %cst_11 : f32 to vector<8x128xf32>
    %14 = arith.maximumf %12, %13 : vector<8x128xf32>
    %c0_12 = arith.constant 0 : index
    %c0_13 = arith.constant 0 : index
    %15 = vector.load %arg6[%c0_12, %c0_13] : memref<128x128xf32, #tpu.memory_space<vmem>>, vector<128x128xf32>
    %cst_14 = arith.constant dense<0.000000e+00> : vector<8x128xf32>
    %16 = tpu.matmul %14, %15, %cst_14 {dimension_numbers = #tpu.dot_dimension_numbers<[1], [0], [0], [1], [0, 0, 1, 1], [], []>, precision = #tpu.contract_precision<fp32>} : vector<8x128xf32>, vector<128x128xf32>, vector<8x128xf32> -> vector<8x128xf32>
    %c0_15 = arith.constant 0 : index
    %c0_16 = arith.constant 0 : index
    %17 = vector.load %arg7[%c0_15, %c0_16] : memref<1x128xf32, #tpu.memory_space<vmem>>, vector<1x128xf32>
    %18 = vector.broadcast %17 : vector<1x128xf32> to vector<8x128xf32>
    %19 = arith.addf %16, %18 : vector<8x128xf32>
    %cst_17 = arith.constant 0.000000e+00 : f32
    %20 = vector.broadcast %cst_17 : f32 to vector<8x128xf32>
    %21 = arith.maximumf %19, %20 : vector<8x128xf32>
    %22 = vector.extract_strided_slice %21 {offsets = [0, 0], sizes = [8, 39], strides = [1, 1]} : vector<8x128xf32> to vector<8x39xf32>
    %c0_18 = arith.constant 0 : index
    %c0_19 = arith.constant 0 : index
    %23 = vector.load %arg8[%c0_18, %c0_19] : memref<8x39xf32, #tpu.memory_space<vmem>>, vector<8x39xf32>
    tpu.vector_store %arg8[%c0_18, %c0_19], %22 {strides = array<i32>} : memref<8x39xf32, #tpu.memory_space<vmem>>, vector<8x39xf32>,
    return
  }
  func.func @transform_0(%arg0: i32) -> (i32, i32) {
    %c0_i32 = arith.constant 0 : i32
    %c0_i32_0 = arith.constant 0 : i32
    return %arg0, %c0_i32 : i32, i32
  }
  func.func @transform_1(%arg0: i32) -> (i32, i32) {
    %c0_i32 = arith.constant 0 : i32
    %c0_i32_0 = arith.constant 0 : i32
    %c0_i32_1 = arith.constant 0 : i32
    return %c0_i32, %c0_i32_0 : i32, i32
  }
  func.func @transform_2(%arg0: i32) -> (i32, i32) {
    %c0_i32 = arith.constant 0 : i32
    %c0_i32_0 = arith.constant 0 : i32
    %c0_i32_1 = arith.constant 0 : i32
    return %c0_i32, %c0_i32_0 : i32, i32
  }
  func.func @transform_3(%arg0: i32) -> (i32, i32) {
    %c0_i32 = arith.constant 0 : i32
    %c0_i32_0 = arith.constant 0 : i32
    %c0_i32_1 = arith.constant 0 : i32
    return %c0_i32, %c0_i32_0 : i32, i32
  }
  func.func @transform_4(%arg0: i32) -> (i32, i32) {
    %c0_i32 = arith.constant 0 : i32
    %c0_i32_0 = arith.constant 0 : i32
    %c0_i32_1 = arith.constant 0 : i32
    return %c0_i32, %c0_i32_0 : i32, i32
  }
  func.func @transform_5(%arg0: i32) -> (i32, i32) {
    %c0_i32 = arith.constant 0 : i32
    %c0_i32_0 = arith.constant 0 : i32
    %c0_i32_1 = arith.constant 0 : i32
    return %c0_i32, %c0_i32_0 : i32, i32
  }
  func.func @transform_6(%arg0: i32) -> (i32, i32) {
    %c0_i32 = arith.constant 0 : i32
    %c0_i32_0 = arith.constant 0 : i32
    %c0_i32_1 = arith.constant 0 : i32
    return %c0_i32, %c0_i32_0 : i32, i32
  }
  func.func @transform_7(%arg0: i32) -> (i32, i32) {
    %c0_i32 = arith.constant 0 : i32
    %c0_i32_0 = arith.constant 0 : i32
    return %arg0, %c0_i32 : i32, i32
  }
}

</mosaic_0001>

<bundles_post_ra>
// kernel: _lambda_.1
= control target key start
LH: loop header
LB: loop body
LE: loop exit
PB: predicated region body
PF: predicated region fallthrough
CT: control target
= control target key end

     0   :  { %12 = vsyncpa [#allocation3], 0  ;;  %s1709_s0 = inlined_call_operand.hbm [shape: f32[8,10], index: 0, kind: input, shape index: {}]   ;;  %s1710_s1 = inlined_call_operand.hbm [shape: f32[10,128], index: 1, kind: input, shape index: {}]   ;;  %s1711_s2 = inlined_call_operand.hbm [shape: f32[1,128], index: 2, kind: input, shape index: {}]   ;;  %s1712_s3 = inlined_call_operand.hbm [shape: f32[128,128], index: 3, kind: input, shape index: {}]   ;;  %s1713_s4 = inlined_call_operand.vmem [shape: f32[1,128], index: 4, kind: input, shape index: {}]   ;;  %s1714_s5 = inlined_call_operand.hbm [shape: f32[128,128], index: 5, kind: input, shape index: {}]   ;;  %s1715_s6 = inlined_call_operand.vmem [shape: f32[1,128], index: 6, kind: input, shape index: {}]   ;;  %s1716_s7 = inlined_call_operand.hbm [shape: f32[8,39], index: 7, kind: output, shape index: {}]  }
   0x1   :  { %13 = vsyncpa [#allocation6], 0 }
   0x2   :  { %14 = vsyncpa [#allocation9], 0  ;;  %s31_s26 = sshll.u32 %s1710_s1, 4  ;;  %s32_s26 = int_to_ptr.hbm [resolvable:$true] %s31_s26 }
   0x3   :  { %15 = vsyncpa [#allocation4], 0  ;;  %s1184_s27 = smov [#allocation5]   ;;  %s55_s8 = sshll.u32 %s1712_s3, 4  ;;  %s56_s8 = int_to_ptr.hbm [resolvable:$true] %s55_s8 }
   0x4   :  { %s33_s28 = sshll.u32 %s1184_s27, 4  ;;  %s1185_s9 = smov 128   ;;  %s34_s28 = int_to_ptr.vmem [resolvable:$true] %s33_s28 }
   0x5   :  { %s1186_s10 = smov 8   ;;  %s1187_s11 = smov [#allocation8]  }
   0x6   :  { %39 = dma.hbm_to_vmem [thread:$0]  %s32_s26, 256, %s34_s28, [#allocation6], %s1185_s9, %s1185_s9, %s1186_s10  }
   0x7   :  { %s57_s12 = sshll.u32 %s1187_s11, 4  ;;  %s21_s15 = sshll.u32 %s1709_s0, 4  ;;  %s58_s12 = int_to_ptr.vmem [resolvable:$true] %s57_s12  ;;  %s22_s15 = int_to_ptr.hbm [resolvable:$true] %s21_s15 }
   0x8   :  { %63 = dma.hbm_to_vmem [thread:$0]  %s56_s8, 2048, %s58_s12, [#allocation9], %s1185_s9, %s1185_s9, %s1186_s10  }
   0x9   :  { %s45_s17 = sshll.u32 %s1711_s2, 4  ;;  %s1188_s18 = smov [#allocation2]   ;;  %s46_s17 = int_to_ptr.hbm [resolvable:$true] %s45_s17 }
   0xa   :  { %s23_s19 = sshll.u32 %s1188_s18, 4  ;;  %s1189_s3 = smov [#allocation7]   ;;  %s24_s19 = int_to_ptr.vmem [resolvable:$true] %s23_s19 }
   0xb   :  { %26 = dma.hbm_to_vmem [thread:$0]  %s22_s15, 128, %s24_s19, [#allocation3]  }
   0xc   :  { %s47_s20 = sshll.u32 %s1189_s3, 4  ;;  %s70_s23 = sshll.u32 %s1714_s5, 4  ;;  %s48_s20 = int_to_ptr.vmem [resolvable:$true] %s47_s20  ;;  %s71_s23 = int_to_ptr.hbm [resolvable:$true] %s70_s23 }
   0xd   :  { %50 = dma.hbm_to_vmem [thread:$0]  %s46_s17, 16, %s48_s20, [#allocation6]  }
   0xe   :  { %s1190_s0 = smov [#allocation10]  }
   0xf   :  { %s72_s24 = sshll.u32 %s1190_s0, 4  ;;  %s73_s24 = int_to_ptr.vmem [resolvable:$true] %s72_s24 }
  0x10   :  { %78 = dma.hbm_to_vmem [thread:$0]  %s71_s23, 2048, %s73_s24, [#allocation9], %s1185_s9, %s1185_s9, %s1186_s10  }
  0x11   :  { %1176 = dma.done.wait [#allocation3], 128  }
  0x12   :  { %1177 = vsyncadd [#allocation3], 4294967168 }
  0x13   :  { %1178 = dma.done.wait [#allocation6], 272  }
  0x14   :  { %1179 = vsyncadd [#allocation6], 4294967024 }
  0x15   :  { %1180 = dma.done.wait [#allocation9], 4096  }
  0x16   :  { %1181 = vsyncadd [#allocation9], 4294963200  ;;  %vm112_vm0 = vcmask 1041408   ;;  %vm108_vm1 = vcmask 80896   ;;  %v103_v0 = vld [vmem:[#allocation5 + $0x8] sm:$0x3] }
  0x17   :  { %v102_v1 = vld [vmem:[#allocation5] sm:$0xff]  ;;  %v101_v2 = vld [vmem:[#allocation2] sm:$0xff]  ;;  %v114_v3 = vsel %vm112_vm0, %v103_v0, 0  ;;  %v291_v6 = vld [vmem:[#allocation8 + $0x78] sm:$0xff]  ;;  %s1191_s26 = smov [#allocation11]   ;;  %s1009_s30 = sshll.u32 %s1716_s7, 4  ;;  %s1010_s30 = int_to_ptr.hbm [resolvable:$true] %s1009_s30 }
  0x18   :  { %v1247_v4 = vand.u32 4294901760, %v102_v1  ;;  %v110_v5 = vsel %vm108_vm1, %v101_v2, 0  ;;  %v290_v7 = vld [vmem:[#allocation8 + $0x70] sm:$0xff]  ;;  %v289_v8 = vld [vmem:[#allocation8 + $0x68] sm:$0xff]  ;;  %v1249_v9 = vand.u32 4294901760, %v114_v3  ;;  %v1253_v11 = vand.u32 4294901760, %v291_v6 }
  0x19   :  { %v1251_v10 = vand.u32 4294901760, %v110_v5  ;;  %v1255_v12 = vand.u32 4294901760, %v290_v7  ;;  %v288_v13 = vld [vmem:[#allocation8 + $0x60] sm:$0xff]  ;;  %v287_v14 = vld [vmem:[#allocation8 + $0x58] sm:$0xff]  ;;  %v1258_v16 = vand.u32 4294901760, %v289_v8  ;;  %v286_v19 = vld [vmem:[#allocation8 + $0x50] sm:$0xff] }
  0x1a   :  { %v164_v15 = vsub.f32 %v102_v1, %v1247_v4  ;;  %v1260_v17 = vand.u32 4294901760, %v288_v13  ;;  %v1262_v18 = vand.u32 4294901760, %v287_v14  ;;  %v158_v20 = vsub.f32 %v114_v3, %v1249_v9  ;;  %131 = vmatpush.msra.mxu0 %v1249_v9  ;;  %215 = vmatpush.msra.mxu3 %v1249_v9  ;;  %v285_v42 = vld [vmem:[#allocation8 + $0x48] sm:$0xff]  ;;  %v284_v43 = vld [vmem:[#allocation8 + $0x40] sm:$0xff]  ;;  %v283_v44 = vld [vmem:[#allocation8 + $0x38] sm:$0xff]  ;;  %s1007_s27 = sshll.u32 %s1191_s26, 4  ;;  %s1008_s27 = int_to_ptr.vmem [resolvable:$true] %s1007_s27 }
  0x1b   :  { %v135_v21 = vsub.f32 %v110_v5, %v1251_v10  ;;  %v1269_v22 = vsub.f32 %v291_v6, %v1253_v11  ;;  %v1271_v23 = vand.u32 4294901760, %v286_v19  ;;  %v1274_v25 = vsub.f32 %v290_v7, %v1255_v12  ;;  %v282_v49 = vld [vmem:[#allocation8 + $0x30] sm:$0xff]  ;;  %v281_v50 = vld [vmem:[#allocation8 + $0x28] sm:$0xff]  ;;  %v280_v54 = vld [vmem:[#allocation8 + $0x20] sm:$0xff] }
  0x1c   :  { %v165_v24 = vand.u32 4294901760, %v164_v15  ;;  %v1277_v26 = vsub.f32 %v289_v8, %v1258_v16  ;;  %v1280_v27 = vsub.f32 %v288_v13, %v1260_v17  ;;  %190 = vmatpush.msra.mxu2 %v158_v20  ;;  %133 = vmatpush.msra.mxu0 %v1247_v4  ;;  %v159_v28 = vand.u32 4294901760, %v158_v20  ;;  %v279_v3 = vld [vmem:[#allocation8 + $0x18] sm:$0xff] }
  0x1d   :  { %v136_v29 = vand.u32 4294901760, %v135_v21  ;;  %v339_v30 = vand.u32 4294901760, %v1269_v22  ;;  %v1285_v31 = vsub.f32 %v287_v14, %v1262_v18  ;;  %217 = vmatpush.msra.mxu3 %v1247_v4  ;;  %v345_v33 = vand.u32 4294901760, %v1274_v25  ;;  %v278_v14 = vld [vmem:[#allocation8 + $0x10] sm:$0xff] }
  0x1e   :  { %v166_v32 = vsub.f32 %v164_v15, %v165_v24  ;;  %v351_v34 = vand.u32 4294901760, %v1277_v26  ;;  %v357_v35 = vand.u32 4294901760, %v1280_v27  ;;  %193 = vmatpush.msra.mxu2 %v164_v15  ;;  %v160_v36 = vsub.f32 %v158_v20, %v159_v28  ;;  %242 = vmatpush.msrb.mxu0 %v159_v28 }
  0x1f   :  { %v137_v37 = vsub.f32 %v135_v21, %v136_v29  ;;  %221 = vmatmul.f32.vlgmr.msra.gmra.mxu3 %v136_v29  ;;  %v340_v38 = vsub.f32 %v1269_v22, %v339_v30  ;;  %v363_v39 = vand.u32 4294901760, %v1285_v31  ;;  %196 = vmatmul.f32.vlgmr.msra.gmra.mxu2 %v135_v21  ;;  %v346_v40 = vsub.f32 %v1274_v25, %v345_v33 }
  0x20   :  { %v352_v41 = vsub.f32 %v1277_v26, %v351_v34  ;;  %v161_v45 = vand.u32 4294901760, %v160_v36  ;;  %v167_v47 = vand.u32 4294901760, %v166_v32  ;;  %297 = vmatpush.msrb.mxu2 %v1253_v11  ;;  %246 = vmatpush.msrb.mxu0 %v165_v24  ;;  %v358_v52 = vsub.f32 %v1280_v27, %v357_v35 }
  0x21   :  { %v138_v46 = vand.u32 4294901760, %v137_v37  ;;  %v341_v48 = vand.u32 4294901760, %v340_v38  ;;  %v347_v51 = vand.u32 4294901760, %v346_v40  ;;  %v1306_v53 = vsub.f32 %v286_v19, %v1271_v23  ;;  %v276_v37 = vld [vmem:[#allocation8] sm:$0xff] }
  0x22   :  { %162 = vmatpush.msra.mxu1 %v161_v45  ;;  %v364_v55 = vsub.f32 %v1285_v31, %v363_v39  ;;  %v1311_v56 = vand.u32 4294901760, %v285_v42  ;;  %v1313_v57 = vand.u32 4294901760, %v284_v43  ;;  %v1315_v58 = vand.u32 4294901760, %v283_v44  ;;  %299 = vmatpush.msrb.mxu2 %v1255_v12 }
  0x23   :  { %139 = vmatmul.f32.vlgmr.msra.gmra.mxu0 %v138_v46  ;;  %342 = vmatpush.msrb.mxu3 %v341_v48  ;;  %v353_v59 = vand.u32 4294901760, %v352_v41  ;;  %v369_v60 = vand.u32 4294901760, %v1306_v53  ;;  %v1319_v61 = vand.u32 4294901760, %v282_v49  ;;  %v1321_v62 = vand.u32 4294901760, %v281_v50 }
  0x24   :  { %168 = vmatpush.msra.mxu1 %v167_v47  ;;  %v1324_v63 = vsub.f32 %v285_v42, %v1311_v56  ;;  %v1327_v0 = vsub.f32 %v284_v43, %v1313_v57  ;;  %v1330_v1 = vsub.f32 %v283_v44, %v1315_v58  ;;  %v1332_v2 = vand.u32 4294901760, %v280_v54  ;;  %440 = vmatpush.msra.mxu0 %v1269_v22  ;;  %v651_v22 = vld [vmem:[#allocation10 + $0x68] sm:$0xff] }
  0x25   :  { %170 = vmatmul.f32.vlgmr.msra.gmra.mxu1 %v1251_v10  ;;  %348 = vmatpush.msrb.mxu3 %v347_v51  ;;  %v359_v5 = vand.u32 4294901760, %v358_v52  ;;  %v370_v6 = vsub.f32 %v1306_v53, %v369_v60  ;;  %v1340_v7 = vsub.f32 %v282_v49, %v1319_v61  ;;  %v365_v15 = vand.u32 4294901760, %v364_v55 }
  0x26   :  { %267 = vmatpush.msrb.mxu1 %v1249_v9  ;;  %301 = vmatpush.msrb.mxu2 %v1258_v16  ;;  %v375_v8 = vand.u32 4294901760, %v1324_v63  ;;  %v381_v13 = vand.u32 4294901760, %v1327_v0  ;;  %v387_v19 = vand.u32 4294901760, %v1330_v1  ;;  %v1348_v20 = vsub.f32 %v281_v50, %v1321_v62 }
  0x27   :  { %354 = vmatpush.msrb.mxu3 %v353_v59  ;;  %v1350_v21 = vand.u32 4294901760, %v279_v3  ;;  %443 = vmatpush.msra.mxu0 %v1274_v25  ;;  %v1359_v24 = vsub.f32 %v280_v54, %v1332_v2  ;;  %v371_v28 = vand.u32 4294901760, %v370_v6  ;;  %v393_v32 = vand.u32 4294901760, %v1340_v7 }
  0x28   :  { %269 = vmatpush.msrb.mxu1 %v1247_v4  ;;  %v376_v9 = vsub.f32 %v1324_v63, %v375_v8  ;;  %303 = vmatpush.msrb.mxu2 %v1260_v17  ;;  %v382_v29 = vsub.f32 %v1327_v0, %v381_v13  ;;  %v1365_v36 = vand.u32 4294901760, %v278_v14  ;;  %v277_v4 = vld [vmem:[#allocation8 + $0x8] sm:$0xff]  ;;  %v388_v40 = vsub.f32 %v1330_v1, %v387_v19 }
  0x29   :  { %360 = vmatpush.msrb.mxu3 %v359_v5  ;;  %v399_v41 = vand.u32 4294901760, %v1348_v20  ;;  %v1375_v42 = vsub.f32 %v279_v3, %v1350_v21  ;;  %446 = vmatpush.msra.mxu0 %v1277_v26  ;;  %v405_v43 = vand.u32 4294901760, %v1359_v24  ;;  %v1380_v44 = vand.u32 4294901760, %v277_v4 }
  0x2a   :  { %493 = vmatpush.msra.mxu1 %v1253_v11  ;;  %305 = vmatpush.msrb.mxu2 %v1262_v18  ;;  %v377_v38 = vand.u32 4294901760, %v376_v9  ;;  %v383_v45 = vand.u32 4294901760, %v382_v29  ;;  %v394_v46 = vsub.f32 %v1340_v7, %v393_v32  ;;  %v1388_v47 = vsub.f32 %v278_v14, %v1365_v36 }
  0x2b   :  { %248 = vmatmul.f32.vlgmr.msrb.gmra.mxu0 %v1251_v10  ;;  %366 = vmatpush.msrb.mxu3 %v365_v15  ;;  %v1390_v48 = vand.u32 4294901760, %v276_v37  ;;  %v389_v49 = vand.u32 4294901760, %v388_v40  ;;  %v411_v50 = vand.u32 4294901760, %v1375_v42  ;;  %v1399_v51 = vsub.f32 %v277_v4, %v1380_v44 }
  0x2c   :  { %307 = vmatpush.msrb.mxu2 %v1271_v23  ;;  %495 = vmatpush.msra.mxu1 %v1255_v12  ;;  %v395_v52 = vand.u32 4294901760, %v394_v46  ;;  %v406_v54 = vsub.f32 %v1359_v24, %v405_v43  ;;  %v417_v55 = vand.u32 4294901760, %v1388_v47  ;;  %vm1000_vm2 = vcmask 318464  }
  0x2d   :  { %271 = vmatmul.f32.vlgmr.msrb.gmra.mxu1 %v1251_v10  ;;  %372 = vmatpush.msrb.mxu3 %v371_v28  ;;  %v400_v10 = vsub.f32 %v1348_v20, %v399_v41  ;;  %v1409_v59 = vsub.f32 %v276_v37, %v1390_v48  ;;  %v412_v5 = vsub.f32 %v1375_v42, %v411_v50  ;;  %v423_v6 = vand.u32 4294901760, %v1399_v51 }
  0x2e   :  { %309 = vmatpush.msrb.mxu2 %v1311_v56  ;;  %449 = vmatpush.msra.mxu0 %v1280_v27  ;;  %v407_v14 = vand.u32 4294901760, %v406_v54  ;;  %v418_v15 = vsub.f32 %v1388_v47, %v417_v55 }
  0x2f   :  { %378 = vmatpush.msrb.mxu3 %v377_v38  ;;  %497 = vmatpush.msra.mxu1 %v1258_v16  ;;  %v401_v3 = vand.u32 4294901760, %v400_v10  ;;  %v429_v9 = vand.u32 4294901760, %v1409_v59  ;;  %v413_v28 = vand.u32 4294901760, %v412_v5  ;;  %v424_v29 = vsub.f32 %v1399_v51, %v423_v6 }
  0x30   :  { %311 = vmatpush.msrb.mxu2 %v1313_v57  ;;  %452 = vmatpush.msra.mxu0 %v1285_v31  ;;  %v419_v4 = vand.u32 4294901760, %v418_v15  ;;  %v650_v31 = vld [vmem:[#allocation10 + $0x60] sm:$0xff] }
  0x31   :  { %384 = vmatpush.msrb.mxu3 %v383_v45  ;;  %499 = vmatpush.msra.mxu1 %v1260_v17  ;;  %v430_v37 = vsub.f32 %v1409_v59, %v429_v9  ;;  %v425_v38 = vand.u32 4294901760, %v424_v29 }
  0x32   :  { %313 = vmatpush.msrb.mxu2 %v1315_v58  ;;  %455 = vmatpush.msra.mxu0 %v1306_v53 }
  0x33   :  { %390 = vmatpush.msrb.mxu3 %v389_v49  ;;  %501 = vmatpush.msra.mxu1 %v1262_v18  ;;  %v431_v40 = vand.u32 4294901760, %v430_v37  ;;  %v644_v49 = vld [vmem:[#allocation10 + $0x30] sm:$0xff]  ;;  %v641_v37 = vld [vmem:[#allocation10 + $0x18] sm:$0xff] }
  0x34   :  { %315 = vmatpush.msrb.mxu2 %v1319_v61  ;;  %458 = vmatpush.msra.mxu0 %v1324_v63  ;;  %v1571_v15 = vand.u32 4294901760, %v644_v49 }
  0x35   :  { %396 = vmatpush.msrb.mxu3 %v395_v52  ;;  %503 = vmatpush.msra.mxu1 %v1271_v23  ;;  %v643_v52 = vld [vmem:[#allocation10 + $0x28] sm:$0xff] }
  0x36   :  { %317 = vmatpush.msrb.mxu2 %v1321_v62  ;;  %461 = vmatpush.msra.mxu0 %v1327_v0 }
  0x37   :  { %402 = vmatpush.msrb.mxu3 %v401_v3  ;;  %505 = vmatpush.msra.mxu1 %v1311_v56  ;;  %v642_v3 = vld [vmem:[#allocation10 + $0x20] sm:$0xff] }
  0x38   :  { %319 = vmatpush.msrb.mxu2 %v1332_v2  ;;  %464 = vmatpush.msra.mxu0 %v1330_v1 }
  0x39   :  { %408 = vmatpush.msrb.mxu3 %v407_v14  ;;  %507 = vmatpush.msra.mxu1 %v1313_v57 }
  0x3a   :  { %321 = vmatpush.msrb.mxu2 %v1350_v21  ;;  %467 = vmatpush.msra.mxu0 %v1340_v7 }
  0x3b   :  { %414 = vmatpush.msrb.mxu3 %v413_v28  ;;  %509 = vmatpush.msra.mxu1 %v1315_v58 }
  0x3c   :  { %323 = vmatpush.msrb.mxu2 %v1365_v36  ;;  %470 = vmatpush.msra.mxu0 %v1348_v20 }
  0x3d   :  { %420 = vmatpush.msrb.mxu3 %v419_v4  ;;  %511 = vmatpush.msra.mxu1 %v1319_v61  ;;  %v1576_v4 = vand.u32 4294901760, %v643_v52 }
  0x3e   :  { %325 = vmatpush.msrb.mxu2 %v1380_v44  ;;  %473 = vmatpush.msra.mxu0 %v1359_v24 }
  0x3f   :  { %426 = vmatpush.msrb.mxu3 %v425_v38  ;;  %513 = vmatpush.msra.mxu1 %v1321_v62 }
  0x40   :  { %327 = vmatpush.msrb.mxu2 %v1390_v48  ;;  %476 = vmatpush.msra.mxu0 %v1375_v42 }
  0x41   :  { %432 = vmatpush.msrb.mxu3 %v431_v40  ;;  %515 = vmatpush.msra.mxu1 %v1332_v2 }
  0x42   :  { %534 = vmatpush.msra.mxu2 %v339_v30  ;;  %479 = vmatpush.msra.mxu0 %v1388_v47  ;;  %v1509_v30 = vand.u32 4294901760, %v651_v22  ;;  %v646_v47 = vld [vmem:[#allocation10 + $0x40] sm:$0xff] }
  0x43   :  { %601 = vmatpush.msra.mxu3 %v1253_v11  ;;  %517 = vmatpush.msra.mxu1 %v1350_v21  ;;  %v1029_v11 = vld [vmem:[#allocation7] ss:$0 sm:$0xff] }
  0x44   :  { %538 = vmatpush.msra.mxu2 %v345_v33  ;;  %482 = vmatpush.msra.mxu0 %v1399_v51  ;;  %v649_v33 = vld [vmem:[#allocation10 + $0x58] sm:$0xff] }
  0x45   :  { %603 = vmatpush.msra.mxu3 %v1255_v12  ;;  %519 = vmatpush.msra.mxu1 %v1365_v36  ;;  %v1513_v53 = vand.u32 4294901760, %v649_v33 }
  0x46   :  { %542 = vmatpush.msra.mxu2 %v351_v34  ;;  %485 = vmatpush.msra.mxu0 %v1409_v59  ;;  %v648_v34 = vld [vmem:[#allocation10 + $0x50] sm:$0xff] }
  0x47   :  { %605 = vmatpush.msra.mxu3 %v1258_v16  ;;  %521 = vmatpush.msra.mxu1 %v1380_v44 }
  0x48   :  { %546 = vmatpush.msra.mxu2 %v357_v35 }
  0x49   :  { %607 = vmatpush.msra.mxu3 %v1260_v17  ;;  %523 = vmatpush.msra.mxu1 %v1390_v48  ;;  %v653_v17 = vld [vmem:[#allocation10 + $0x78] sm:$0xff] }
  0x4a   :  { %550 = vmatpush.msra.mxu2 %v363_v39  ;;  %v1505_v26 = vand.u32 4294901760, %v653_v17  ;;  %v1511_v39 = vand.u32 4294901760, %v650_v31 }
  0x4b   :  { %609 = vmatpush.msra.mxu3 %v1262_v18  ;;  %v652_v18 = vld [vmem:[#allocation10 + $0x70] sm:$0xff] }
  0x4c   :  { %554 = vmatpush.msra.mxu2 %v369_v60  ;;  %v1507_v27 = vand.u32 4294901760, %v652_v18  ;;  %v1518_v60 = vsub.f32 %v653_v17, %v1505_v26  ;;  %659 = vmatpush.msrb.mxu0 %v1505_v26  ;;  %v1530_v1 = vsub.f32 %v650_v31, %v1511_v39  ;;  %v1599_v31 = vand.u32 4294901760, %v641_v37 }
  0x4d   :  { %611 = vmatpush.msra.mxu3 %v1271_v23 }
  0x4e   :  { %558 = vmatpush.msra.mxu2 %v375_v8  ;;  %v701_v8 = vand.u32 4294901760, %v1518_v60  ;;  %661 = vmatpush.msrb.mxu0 %v1507_v27  ;;  %v719_v24 = vand.u32 4294901760, %v1530_v1 }
  0x4f   :  { %613 = vmatpush.msra.mxu3 %v1311_v56  ;;  %v1515_v56 = vand.u32 4294901760, %v648_v34 }
  0x50   :  { %562 = vmatpush.msra.mxu2 %v381_v13  ;;  %663 = vmatpush.msrb.mxu0 %v1509_v30  ;;  %v720_v45 = vsub.f32 %v1530_v1, %v719_v24 }
  0x51   :  { %615 = vmatpush.msra.mxu3 %v1313_v57  ;;  %v647_v57 = vld [vmem:[#allocation10 + $0x48] sm:$0xff]  ;;  %v1536_v7 = vsub.f32 %v648_v34, %v1515_v56 }
  0x52   :  { %566 = vmatpush.msra.mxu2 %v387_v19  ;;  %v1527_v63 = vand.u32 4294901760, %v647_v57  ;;  %665 = vmatpush.msrb.mxu0 %v1511_v39  ;;  %v721_v28 = vand.u32 4294901760, %v720_v45 }
  0x53   :  { %617 = vmatpush.msra.mxu3 %v1315_v58  ;;  %v731_v46 = vand.u32 4294901760, %v1536_v7 }
  0x54   :  { %570 = vmatpush.msra.mxu2 %v393_v32  ;;  %667 = vmatpush.msrb.mxu0 %v1513_v53 }
  0x55   :  { %619 = vmatpush.msra.mxu3 %v1319_v61  ;;  %v1521_v61 = vsub.f32 %v652_v18, %v1507_v27  ;;  %v732_v29 = vsub.f32 %v1536_v7, %v731_v46 }
  0x56   :  { %574 = vmatpush.msra.mxu2 %v399_v41  ;;  %v702_v41 = vsub.f32 %v1518_v60, %v701_v8  ;;  %669 = vmatpush.msrb.mxu0 %v1515_v56 }
  0x57   :  { %621 = vmatpush.msra.mxu3 %v1321_v62  ;;  %v1524_v62 = vsub.f32 %v651_v22, %v1509_v30  ;;  %v707_v13 = vand.u32 4294901760, %v1521_v61  ;;  %v733_v34 = vand.u32 4294901760, %v732_v29  ;;  %v639_v29 = vld [vmem:[#allocation10 + $0x8] sm:$0xff] }
  0x58   :  { %578 = vmatpush.msra.mxu2 %v405_v43  ;;  %671 = vmatpush.msrb.mxu0 %v1527_v63 }
  0x59   :  { %623 = vmatpush.msra.mxu3 %v1332_v2  ;;  %v1533_v2 = vsub.f32 %v649_v33, %v1513_v53  ;;  %v713_v19 = vand.u32 4294901760, %v1524_v62  ;;  %v708_v42 = vsub.f32 %v1521_v61, %v707_v13 }
  0x5a   :  { %582 = vmatpush.msra.mxu2 %v411_v50  ;;  %v703_v50 = vand.u32 4294901760, %v702_v41 }
  0x5b   :  { %625 = vmatpush.msra.mxu3 %v1350_v21  ;;  %v725_v32 = vand.u32 4294901760, %v1533_v2  ;;  %v714_v43 = vsub.f32 %v1524_v62, %v713_v19  ;;  %v709_v51 = vand.u32 4294901760, %v708_v42  ;;  %v1616_v42 = vsub.f32 %v641_v37, %v1599_v31 }
  0x5c   :  { %586 = vmatpush.msra.mxu2 %v417_v55  ;;  %704 = vmatpush.msrb.mxu1 %v703_v50 }
  0x5d   :  { %627 = vmatpush.msra.mxu3 %v1365_v36  ;;  %v1545_v36 = vsub.f32 %v647_v57, %v1527_v63  ;;  %v726_v55 = vsub.f32 %v1533_v2, %v725_v32  ;;  %v715_v5 = vand.u32 4294901760, %v714_v43  ;;  %v773_v50 = vand.u32 4294901760, %v1616_v42 }
  0x5e   :  { %590 = vmatpush.msra.mxu2 %v423_v6  ;;  %v1566_v6 = vand.u32 4294901760, %v646_v47  ;;  %710 = vmatpush.msrb.mxu1 %v709_v51 }
  0x5f   :  { %629 = vmatpush.msra.mxu3 %v1380_v44  ;;  %v737_v59 = vand.u32 4294901760, %v1545_v36  ;;  %v727_v17 = vand.u32 4294901760, %v726_v55  ;;  %v774_v55 = vsub.f32 %v1616_v42, %v773_v50 }
  0x60   :  { %594 = vmatpush.msra.mxu2 %v429_v9  ;;  %v1579_v38 = vsub.f32 %v646_v47, %v1566_v6  ;;  %716 = vmatpush.msrb.mxu1 %v715_v5 }
  0x61   :  { %631 = vmatpush.msra.mxu3 %v1390_v48  ;;  %v645_v48 = vld [vmem:[#allocation10 + $0x38] sm:$0xff]  ;;  %v738_v18 = vsub.f32 %v1545_v36, %v737_v59  ;;  %673 = vmatpush.msrb.mxu0 %v1566_v6  ;;  %v775_v5 = vand.u32 4294901760, %v774_v55 }
  0x62   :  { %v1569_v14 = vand.u32 4294901760, %v645_v48  ;;  %v743_v22 = vand.u32 4294901760, %v1579_v38  ;;  %722 = vmatpush.msrb.mxu1 %v721_v28 }
  0x64   :  { %v1582_v40 = vsub.f32 %v645_v48, %v1569_v14  ;;  %728 = vmatpush.msrb.mxu1 %v727_v17  ;;  %675 = vmatpush.msrb.mxu0 %v1569_v14  ;;  %v638_v17 = vld [vmem:[#allocation10] sm:$0xff] }
  0x66   :  { %734 = vmatpush.msrb.mxu1 %v733_v34  ;;  %677 = vmatpush.msrb.mxu0 %v1571_v15  ;;  %v688_v34 = vand.u32 4294901760, %v638_v17 }
  0x68   :  { %679 = vmatpush.msrb.mxu0 %v1576_v4 }
  0xa0   :  { %v140_v12 = vpop.f32.mrf.mxu0 }
  0xa1   :  { %v141_v16 = vadd.f32 %v1029_v11, %v140_v12  ;;  %v1586_v11 = vsub.f32 %v644_v49, %v1571_v15  ;;  %v1588_v12 = vand.u32 4294901760, %v642_v3 }
  0xa2   :  { %v171_v23 = vpop.f32.mrf.mxu1  ;;  %v197_v25 = vpop.f32.mrf.mxu2 }
  0xa3   :  { %v172_v35 = vadd.f32 %v171_v23, %v141_v16  ;;  %v222_v58 = vpop.f32.mrf.mxu3  ;;  %v749_v23 = vand.u32 4294901760, %v1582_v40  ;;  %v755_v57 = vand.u32 4294901760, %v1586_v11  ;;  %681 = vmatpush.msrb.mxu0 %v1588_v12 }
  0xa5   :  { %v198_v0 = vadd.f32 %v197_v25, %v172_v35  ;;  %v1597_v25 = vsub.f32 %v643_v52, %v1576_v4  ;;  %v744_v35 = vsub.f32 %v1579_v38, %v743_v22  ;;  %v756_v45 = vsub.f32 %v1586_v11, %v755_v57  ;;  %683 = vmatpush.msrb.mxu0 %v1599_v31 }
  0xa7   :  { %v223_v20 = vadd.f32 %v222_v58, %v198_v0  ;;  %v1607_v58 = vsub.f32 %v642_v3, %v1588_v12  ;;  %v761_v41 = vand.u32 4294901760, %v1597_v25  ;;  %v757_v51 = vand.u32 4294901760, %v756_v45 }
  0xa8   :  { %v249_v21 = vpop.f32.mrf.mxu0 }
  0xa9   :  { %v250_v44 = vadd.f32 %v249_v21, %v223_v20  ;;  %v739_v20 = vand.u32 4294901760, %v738_v18  ;;  %v750_v21 = vsub.f32 %v1582_v40, %v749_v23  ;;  %v767_v47 = vand.u32 4294901760, %v1607_v58 }
  0xaa   :  { %v272_v10 = vpop.f32.mrf.mxu1 }
  0xab   :  { %v273_v54 = vadd.f32 %v272_v10, %v250_v44  ;;  %v745_v44 = vand.u32 4294901760, %v744_v35  ;;  %740 = vmatpush.msrb.mxu1 %v739_v20  ;;  %v751_v49 = vand.u32 4294901760, %v750_v21  ;;  %v762_v10 = vsub.f32 %v1597_v25, %v761_v41 }
  0xac   :  { %v768_v52 = vsub.f32 %v1607_v58, %v767_v47  ;;  %v790_v20 = vsub.f32 %v638_v17, %v688_v34 }
  0xad   :  { %v275_v9 = vmax.f32 %v273_v54, 0.0  ;;  %746 = vmatpush.msrb.mxu1 %v745_v44  ;;  %v763_v54 = vand.u32 4294901760, %v762_v10 }
  0xae   :  { %v769_v3 = vand.u32 4294901760, %v768_v52  ;;  %v791_v44 = vand.u32 4294901760, %v790_v20 }
  0xaf   :  { %v328_v16 = vand.u32 4294901760, %v275_v9  ;;  %752 = vmatpush.msrb.mxu1 %v751_v49 }
  0xb1   :  { %v329_v33 = vsub.f32 %v275_v9, %v328_v16  ;;  %434 = vmatmul.f32.vlgmr.msrb.gmra.mxu3 %v328_v16  ;;  %758 = vmatpush.msrb.mxu1 %v757_v51  ;;  %v640_v9 = vld [vmem:[#allocation10 + $0x10] sm:$0xff] }
  0xb2   :  { %855 = vmatpush.msrb.mxu3 %v1505_v26  ;;  %v684_v28 = vand.u32 4294901760, %v640_v9 }
  0xb3   :  { %488 = vmatmul.f32.vlgmr.msra.gmra.mxu0 %v329_v33  ;;  %v330_v0 = vand.u32 4294901760, %v329_v33  ;;  %764 = vmatpush.msrb.mxu1 %v763_v54 }
  0xb4   :  { %857 = vmatpush.msrb.mxu3 %v1507_v27  ;;  %v778_v37 = vsub.f32 %v640_v9, %v684_v28  ;;  %685 = vmatpush.msrb.mxu0 %v684_v28 }
  0xb5   :  { %527 = vmatmul.f32.vlgmr.msra.gmra.mxu1 %v330_v0  ;;  %v331_v43 = vsub.f32 %v329_v33, %v330_v0 }
  0xb6   :  { %859 = vmatpush.msrb.mxu3 %v1509_v30  ;;  %770 = vmatpush.msrb.mxu1 %v769_v3  ;;  %v779_v18 = vand.u32 4294901760, %v778_v37 }
  0xb7   :  { %v332_v48 = vand.u32 4294901760, %v331_v43 }
  0xb8   :  { %861 = vmatpush.msrb.mxu3 %v1511_v39  ;;  %776 = vmatpush.msrb.mxu1 %v775_v5  ;;  %v780_v35 = vsub.f32 %v778_v37, %v779_v18 }
  0xb9   :  { %333 = vmatmul.f32.vlgmr.msrb.gmra.mxu2 %v332_v48  ;;  %633 = vmatmul.f32.vlgmr.msra.gmra.mxu3 %v328_v16  ;;  %v792_v48 = vsub.f32 %v790_v20, %v791_v44 }
  0xba   :  { %802 = vmatpush.msrb.mxu2 %v1518_v60  ;;  %863 = vmatpush.msrb.mxu3 %v1513_v53  ;;  %v781_v21 = vand.u32 4294901760, %v780_v35 }
  0xbb   :  { %v793_v49 = vand.u32 4294901760, %v792_v48 }
  0xbc   :  { %805 = vmatpush.msrb.mxu2 %v1521_v61  ;;  %865 = vmatpush.msrb.mxu3 %v1515_v56 }
  0xbd   :  { %782 = vmatpush.msrb.mxu1 %v781_v21 }
  0xbe   :  { %808 = vmatpush.msrb.mxu2 %v1524_v62  ;;  %867 = vmatpush.msrb.mxu3 %v1527_v63 }
  0xc0   :  { %811 = vmatpush.msrb.mxu2 %v1530_v1  ;;  %869 = vmatpush.msrb.mxu3 %v1566_v6 }
  0xc1   :  { %596 = vmatmul.f32.vlgmr.msra.gmra.mxu2 %v328_v16  ;;  %v686_v16 = vand.u32 4294901760, %v639_v29 }
  0xc2   :  { %814 = vmatpush.msrb.mxu2 %v1533_v2  ;;  %871 = vmatpush.msrb.mxu3 %v1569_v14 }
  0xc3   :  { %v784_v33 = vsub.f32 %v639_v29, %v686_v16  ;;  %687 = vmatpush.msrb.mxu0 %v686_v16 }
  0xc4   :  { %817 = vmatpush.msrb.mxu2 %v1536_v7  ;;  %873 = vmatpush.msrb.mxu3 %v1571_v15 }
  0xc5   :  { %v785_v0 = vand.u32 4294901760, %v784_v33  ;;  %689 = vmatpush.msrb.mxu0 %v688_v34 }
  0xc6   :  { %820 = vmatpush.msrb.mxu2 %v1545_v36  ;;  %875 = vmatpush.msrb.mxu3 %v1576_v4 }
  0xc7   :  { %896 = vmatpush.msra.mxu0 %v701_v8  ;;  %v786_v43 = vsub.f32 %v784_v33, %v785_v0 }
  0xc8   :  { %823 = vmatpush.msrb.mxu2 %v1579_v38  ;;  %877 = vmatpush.msrb.mxu3 %v1588_v12 }
  0xc9   :  { %900 = vmatpush.msra.mxu0 %v707_v13  ;;  %v787_v45 = vand.u32 4294901760, %v786_v43 }
  0xca   :  { %826 = vmatpush.msrb.mxu2 %v1582_v40  ;;  %879 = vmatpush.msrb.mxu3 %v1599_v31 }
  0xcb   :  { %904 = vmatpush.msra.mxu0 %v713_v19  ;;  %788 = vmatpush.msrb.mxu1 %v787_v45 }
  0xcc   :  { %829 = vmatpush.msrb.mxu2 %v1586_v11  ;;  %881 = vmatpush.msrb.mxu3 %v684_v28 }
  0xcd   :  { %908 = vmatpush.msra.mxu0 %v719_v24  ;;  %794 = vmatpush.msrb.mxu1 %v793_v49 }
  0xce   :  { %832 = vmatpush.msrb.mxu2 %v1597_v25  ;;  %883 = vmatpush.msrb.mxu3 %v686_v16 }
  0xcf   :  { %963 = vmatpush.msra.mxu1 %v1505_v26  ;;  %912 = vmatpush.msra.mxu0 %v725_v32  ;;  %v1030_v26 = vld [vmem:[%s1713_s4] ss:$0 sm:$0xff] }
  0xd0   :  { %835 = vmatpush.msrb.mxu2 %v1607_v58  ;;  %885 = vmatpush.msrb.mxu3 %v688_v34 }
  0xd1   :  { %965 = vmatpush.msra.mxu1 %v1507_v27  ;;  %916 = vmatpush.msra.mxu0 %v731_v46  ;;  %v1031_v46 = vld [vmem:[%s1715_s6] ss:$0 sm:$0xff] }
  0xd2   :  { %838 = vmatpush.msrb.mxu2 %v1616_v42 }
  0xd3   :  { %967 = vmatpush.msra.mxu1 %v1509_v30  ;;  %920 = vmatpush.msra.mxu0 %v737_v59 }
  0xd4   :  { %841 = vmatpush.msrb.mxu2 %v778_v37 }
  0xd5   :  { %969 = vmatpush.msra.mxu1 %v1511_v39  ;;  %924 = vmatpush.msra.mxu0 %v743_v22 }
  0xd6   :  { %844 = vmatpush.msrb.mxu2 %v784_v33 }
  0xd7   :  { %971 = vmatpush.msra.mxu1 %v1513_v53  ;;  %928 = vmatpush.msra.mxu0 %v749_v23 }
  0xd8   :  { %847 = vmatpush.msrb.mxu2 %v790_v20 }
  0xd9   :  { %973 = vmatpush.msra.mxu1 %v1515_v56  ;;  %932 = vmatpush.msra.mxu0 %v755_v57 }
  0xdb   :  { %975 = vmatpush.msra.mxu1 %v1527_v63  ;;  %936 = vmatpush.msra.mxu0 %v761_v41 }
  0xdd   :  { %977 = vmatpush.msra.mxu1 %v1566_v6  ;;  %940 = vmatpush.msra.mxu0 %v767_v47 }
  0xdf   :  { %979 = vmatpush.msra.mxu1 %v1569_v14  ;;  %944 = vmatpush.msra.mxu0 %v773_v50 }
  0xe1   :  { %981 = vmatpush.msra.mxu1 %v1571_v15  ;;  %948 = vmatpush.msra.mxu0 %v779_v18 }
  0xe3   :  { %983 = vmatpush.msra.mxu1 %v1576_v4  ;;  %952 = vmatpush.msra.mxu0 %v785_v0 }
  0xe5   :  { %985 = vmatpush.msra.mxu1 %v1588_v12  ;;  %956 = vmatpush.msra.mxu0 %v791_v44 }
  0xe7   :  { %987 = vmatpush.msra.mxu1 %v1599_v31 }
  0xe9   :  { %989 = vmatpush.msra.mxu1 %v684_v28 }
  0xeb   :  { %991 = vmatpush.msra.mxu1 %v686_v16 }
  0xed   :  { %993 = vmatpush.msra.mxu1 %v688_v34 }
 0x130   :  { %v489_v56 = vpop.f32.mrf.mxu0 }
 0x132   :  { %v528_v61 = vpop.f32.mrf.mxu1 }
 0x134   :  { %v435_v27 = vpop.f32.mrf.mxu3 }
 0x13c   :  { %v334_v30 = vpop.f32.mrf.mxu2  ;;  %v634_v2 = vpop.f32.mrf.mxu3 }
 0x13d   :  { %v335_v39 = vadd.f32 %v1030_v26, %v334_v30 }
 0x13f   :  { %v436_v53 = vadd.f32 %v435_v27, %v335_v39 }
 0x141   :  { %v490_v60 = vadd.f32 %v489_v56, %v436_v53 }
 0x143   :  { %v529_v62 = vadd.f32 %v528_v61, %v490_v60 }
 0x144   :  { %v597_v63 = vpop.f32.mrf.mxu2 }
 0x145   :  { %v598_v1 = vadd.f32 %v597_v63, %v529_v62 }
 0x147   :  { %v635_v7 = vadd.f32 %v634_v2, %v598_v1 }
 0x149   :  { %v637_v8 = vmax.f32 %v635_v7, 0.0 }
 0x14b   :  { %v690_v13 = vand.u32 4294901760, %v637_v8 }
 0x14d   :  { %v691_v19 = vsub.f32 %v637_v8, %v690_v13  ;;  %796 = vmatmul.f32.vlgmr.msrb.gmra.mxu1 %v690_v13 }
 0x14f   :  { %850 = vmatmul.f32.vlgmr.msrb.gmra.mxu2 %v691_v19  ;;  %v692_v24 = vand.u32 4294901760, %v691_v19 }
 0x151   :  { %889 = vmatmul.f32.vlgmr.msrb.gmra.mxu3 %v692_v24  ;;  %v693_v32 = vsub.f32 %v691_v19, %v692_v24 }
 0x153   :  { %v694_v36 = vand.u32 4294901760, %v693_v32 }
 0x155   :  { %695 = vmatmul.f32.vlgmr.msrb.gmra.mxu0 %v694_v36  ;;  %995 = vmatmul.f32.vlgmr.msra.gmra.mxu1 %v690_v13 }
 0x15d   :  { %958 = vmatmul.f32.vlgmr.msra.gmra.mxu0 %v690_v13 }
 0x1ca   :  { %v797_v59 = vpop.f32.mrf.mxu1 }
 0x1d2   :  { %v696_v6 = vpop.f32.mrf.mxu0  ;;  %v851_v4 = vpop.f32.mrf.mxu2 }
 0x1d3   :  { %v697_v14 = vadd.f32 %v1031_v46, %v696_v6  ;;  %v996_v23 = vpop.f32.mrf.mxu1 }
 0x1d4   :  { %v890_v40 = vpop.f32.mrf.mxu3 }
 0x1d5   :  { %v798_v15 = vadd.f32 %v797_v59, %v697_v14 }
 0x1d7   :  { %v852_v38 = vadd.f32 %v851_v4, %v798_v15 }
 0x1d9   :  { %v891_v11 = vadd.f32 %v890_v40, %v852_v38 }
 0x1da   :  { %v959_v12 = vpop.f32.mrf.mxu0 }
 0x1db   :  { %v960_v22 = vadd.f32 %v959_v12, %v891_v11 }
 0x1dd   :  { %v997_v25 = vadd.f32 %v996_v23, %v960_v22 }
 0x1df   :  { %v999_v31 = vmax.f32 %v997_v25, 0.0 }
 0x1e1   :  { %1001 = vst.msk [vmem:[#allocation11] sm:$0xff] %vm1000_vm2, %v999_v31 }
 0x1e2   :  { %1012 = dma.vmem_to_hbm [thread:$0]  %s1008_s27, 128, %s1010_s30, [#allocation4]  }
 0x1e3   :  { %1182 = dma.done.wait [#allocation4], 128  }
 0x1e4   :  { %1183 = vsyncadd [#allocation4], 4294967168 }
 0x1e5   :  { %1017 = vsyncpa [#allocation3], 1 }
 0x1e6   :  { %1018 = vsyncpa [#allocation6], 1 }
 0x1e7   :  { %1019 = vsyncpa [#allocation9], 1 }
 0x1e8   :  { %1020 = vsyncpa [#allocation4], 1 }

</bundles_post_ra>
